<compile_context>
chip_gen: v6e
topology: v6e:2x2x1
jax: 0.10.0
libtpu: 0.0.40
codegen_flags: <defaults>
</compile_context>

<pallas_src>
import functools

import jax
import jax.numpy as jnp
from jax.experimental import pallas as pl
from jax.experimental.pallas import tpu as pltpu

LANE = 128
SUB = 8
FOLD_ROWS = 256  # rows folded per inner-loop segment (256*128*4 = 128 KiB f32)


def _default_chunk_rows():
    """Per-generation chunk size targeting multi-MiB candidate blocks per step."""
    try:
        kind = jax.devices()[0].device_kind.lower()
    except Exception:
        return 4096
    if "v7" in kind:
        return 16384   # 8 MiB f32 candidate block (VMEM is 64 MiB -> limit set below)
    if "v6" in kind:
        return 8192    # 4 MiB f32 candidate block
    return 4096        # v5e and older: 2 MiB f32 candidate block


def _mse_kernel(x_ref, t_ref, out_ref, acc_ref, *,
                inv_len, chunk_rows, fold_rows, rows, needs_mask, unroll):
    # x_ref  : (chunk_rows, LANE)     candidate i, chunk k (first array axis squeezed)
    # t_ref  : (chunk_rows, LANE)     shared target chunk k (fetched once per k)
    # out_ref: (n, LANE)              resident output; row i holds loss_i broadcast
    # acc_ref: (n, SUB, LANE) f32     persistent per-candidate partial sums
    k = pl.program_id(0)
    i = pl.program_id(1)
    nk = pl.num_programs(0)

    n_folds = chunk_rows // fold_rows

    def partial_sum(valid):
        """Sum of squared diffs over this chunk, folded to an (8, LANE) partial.

        Bounded fold: fold_rows rows per segment so live d/dd vregs stay small
        even for multi-MiB chunks (avoids VMEM spills at large chunk_rows).
        """
        def seg(s):
            start = pl.multiple_of(s * fold_rows, fold_rows)
            xs = x_ref[pl.ds(start, fold_rows), :].astype(jnp.float32)
            ts = t_ref[pl.ds(start, fold_rows), :].astype(jnp.float32)
            d = xs - ts
            dd = d * d
            if valid is not None:
                # Mask rows that come from Pallas block padding (unspecified
                # values) on the last, partial chunk. Applied after squaring so
                # NaN/Inf garbage cannot leak into the sum.
                rid = start + jax.lax.broadcasted_iota(
                    jnp.int32, (fold_rows, LANE), 0)
                dd = jnp.where(rid < valid, dd, 0.0)
            # Pure VPU vreg adds (no XLU): fold rows in groups of 8 sublanes.
            return dd.reshape(fold_rows // SUB, SUB, LANE).sum(axis=0)

        if n_folds == 1:
            return seg(0)
        return jax.lax.fori_loop(
            0, n_folds,
            lambda s, acc: acc + seg(s),
            jnp.zeros((SUB, LANE), jnp.float32),
            unroll=unroll)

    @pl.when(k == 0)
    def _():
        acc_ref[i] = jnp.zeros((SUB, LANE), jnp.float32)

    if needs_mask:
        # Mask cost only on the final (partial) chunk; full chunks are mask-free.
        @pl.when(k != nk - 1)
        def _():
            acc_ref[i] = acc_ref[i] + partial_sum(None)

        @pl.when(k == nk - 1)
        def _():
            acc_ref[i] = acc_ref[i] + partial_sum(rows - k * chunk_rows)
    else:
        acc_ref[i] = acc_ref[i] + partial_sum(None)

    @pl.when(k == nk - 1)
    def _():
        # Single small cross-lane/sublane reduce per candidate, then the mean
        # over the TRUE (unpadded) element count.
        total = jnp.sum(acc_ref[i]) * inv_len
        out_ref[pl.ds(i, 1), :] = jnp.broadcast_to(total, (1, LANE))


def mse_loss_pallas(inputs, targets, *, chunk_rows=None):
    """Returns a length-N float32 array of MSE losses (same values/order as the
    torch module's list). Assumes contiguous row-major inputs (matches .view(-1))."""
    n = inputs.shape[0]
    t_flat = targets.reshape(-1)
    L = int(t_flat.shape[0])
    x_flat = inputs.reshape(n, -1)
    assert x_flat.shape[1] == L, "each inputs[i] must flatten to targets' length"

    # Pad the flat axis only up to a multiple of LANE (128) so it can be viewed
    # as (rows, 128), with a floor of one full (8,128) tile for tiny inputs.
    # Zero padding in BOTH tensors -> padded diffs are exactly 0; the mean
    # divides by the unpadded L. No-op (no copy) when L % 128 == 0 and L >= 1024.
    padded_len = max(SUB * LANE, ((L + LANE - 1) // LANE) * LANE)
    pad = padded_len - L
    if pad:
        # TODO(synk): a truly copy-free path for L % 128 != 0 would need a
        # non-reshaped (element-indexed) layout; the copy here is <= one lane
        # row (plus the tiny-input floor) per tensor.
        x_flat = jnp.pad(x_flat, ((0, 0), (0, pad)))
        t_flat = jnp.pad(t_flat, (0, pad))
    rows = padded_len // LANE  # >= 8

    # --- chunk sizing ---------------------------------------------------
    if chunk_rows is None:
        chunk_rows = _default_chunk_rows()
    chunk_rows = max(SUB, int(chunk_rows))
    chunk_rows = min(chunk_rows, (rows // SUB) * SUB)   # <= rows, multiple of 8
    chunk_rows = (chunk_rows // SUB) * SUB
    if chunk_rows >= FOLD_ROWS:
        chunk_rows = (chunk_rows // FOLD_ROWS) * FOLD_ROWS
        fold_rows = FOLD_ROWS
    else:
        fold_rows = chunk_rows                          # single fold segment

    num_chunks = pl.cdiv(rows, chunk_rows)
    needs_mask = (rows % chunk_rows) != 0

    n_folds = chunk_rows // fold_rows
    if n_folds <= 16:
        unroll = True
    elif n_folds % 8 == 0:
        unroll = 8
    elif n_folds % 4 == 0:
        unroll = 4
    else:
        unroll = 2 if n_folds % 2 == 0 else 1

    x3 = x_flat.reshape(n, rows, LANE)
    t2 = t_flat.reshape(rows, LANE)

    # --- VMEM budget (explicit so big chunks work on v7x's 64 MiB VMEM) --
    x_blk_bytes = chunk_rows * LANE * x3.dtype.itemsize
    t_blk_bytes = chunk_rows * LANE * t2.dtype.itemsize
    vmem_needed = (2 * (x_blk_bytes + t_blk_bytes)          # double-buffered inputs
                   + n * SUB * LANE * 4                      # accumulator scratch
                   + 2 * n * LANE * 4)                       # output block
    vmem_limit = int(min(max(vmem_needed + (4 << 20), 16 << 20), 96 << 20))

    kernel = functools.partial(
        _mse_kernel,
        inv_len=1.0 / float(L),   # per-element mean: 1/L (not 1/n)
        chunk_rows=chunk_rows,
        fold_rows=fold_rows,
        rows=rows,
        needs_mask=needs_mask,
        unroll=unroll,
    )

    out = pl.pallas_call(
        kernel,
        out_shape=jax.ShapeDtypeStruct((n, LANE), jnp.float32),
        # Chunk axis OUTER, candidate axis INNER: each target chunk is DMA'd
        # once and reused for all n candidates.
        grid=(num_chunks, n),
        in_specs=[
            # candidate chunk (first array axis squeezed out of the kernel ref)
            pl.BlockSpec((None, chunk_rows, LANE), lambda k, i: (i, k, 0)),
            # shared target chunk (block index independent of i -> no re-fetch)
            pl.BlockSpec((chunk_rows, LANE), lambda k, i: (k, 0)),
        ],
        # Output block index is constant -> resident; written only on the last chunk.
        out_specs=pl.BlockSpec((n, LANE), lambda k, i: (0, 0)),
        scratch_shapes=[pltpu.VMEM((n, SUB, LANE), jnp.float32)],
        compiler_params=pltpu.CompilerParams(
            dimension_semantics=("arbitrary", "arbitrary"),
            vmem_limit_bytes=vmem_limit,
        ),
    )(x3, t2)

    # Single device array (avoids n separate host round trips).
    return out[:, 0]


if __name__ == "__main__":
    key = jax.random.PRNGKey(0)
    k1, k2, k3, k4, k5, k6 = jax.random.split(key, 6)

    # Case 1: small NCHW stack with forced tiny chunks (rows=16, chunk_rows=8 ->
    # 2 chunks): exercises init + accumulate + finalize and chunk-outer target reuse.
    N, B, C, H, W = 3, 2, 4, 16, 16
    inputs = jax.random.normal(k1, (N, B, C, H, W), dtype=jnp.float32)
    targets = jax.random.normal(k2, (B, C, H, W), dtype=jnp.float32)
    losses = jax.block_until_ready(mse_loss_pallas(inputs, targets, chunk_rows=8))
    t_flat = targets.reshape(-1)
    ref = jnp.stack([jnp.mean((inputs[i].reshape(-1) - t_flat) ** 2) for i in range(N)])
    assert jnp.allclose(losses, ref, rtol=1e-5, atol=1e-6), (losses, ref)

    # Case 2: ragged last chunk (24 rows, chunk_rows=16) -> in-kernel row mask
    # applied on the final chunk only.
    N2, B2, C2, H2, W2 = 2, 2, 6, 16, 16
    inputs2 = jax.random.normal(k3, (N2, B2, C2, H2, W2), dtype=jnp.float32)
    targets2 = jax.random.normal(k4, (B2, C2, H2, W2), dtype=jnp.float32)
    losses2 = jax.block_until_ready(mse_loss_pallas(inputs2, targets2, chunk_rows=16))
    t2_flat = targets2.reshape(-1)
    ref2 = jnp.stack([jnp.mean((inputs2[i].reshape(-1) - t2_flat) ** 2) for i in range(N2)])
    assert jnp.allclose(losses2, ref2, rtol=1e-5, atol=1e-6), (losses2, ref2)

    # Case 3: flat length not a multiple of 128 (lane tail) with the default
    # device-tuned chunk_rows (clamps to a single chunk for this tiny input).
    N3 = 2
    inputs3 = jax.random.normal(k5, (N3, 3, 7, 10), dtype=jnp.float32)
    targets3 = jax.random.normal(k6, (3, 7, 10), dtype=jnp.float32)
    losses3 = jax.block_until_ready(mse_loss_pallas(inputs3, targets3))
    t3_flat = targets3.reshape(-1)
    ref3 = jnp.stack([jnp.mean((inputs3[i].reshape(-1) - t3_flat) ** 2) for i in range(N3)])
    assert jnp.allclose(losses3, ref3, rtol=1e-5, atol=1e-6), (losses3, ref3)

    print("KERNEL_OK")
</pallas_src>

<mosaic_0001>
module attributes {stable_mosaic.version = 11 : i64} {
  func.func @_mse_kernel(%arg0: i32, %arg1: i32, %arg2: memref<1x8x128xf32, #tpu.memory_space<vmem>>, %arg3: memref<8x128xf32, #tpu.memory_space<vmem>>, %arg4: memref<3x128xf32, #tpu.memory_space<vmem>>, %arg5: memref<3x8x128xf32, #tpu.memory_space<vmem>>) attributes {dimension_semantics = [#tpu.dimension_semantics<arbitrary>, #tpu.dimension_semantics<arbitrary>], iteration_bounds = array<i64: 2, 3>, scalar_prefetch = 0 : i64, scratch_operands = 1 : i64, tpu.core_type = #tpu.core_type<tc>, window_params = [{transform_indices = @transform_0, window_bounds = array<i64: 1, 8, 128>}, {transform_indices = @transform_1, window_bounds = array<i64: 8, 128>}, {pipeline_mode = #tpu.pipeline_mode<synchronous>, transform_indices = @transform_2, window_bounds = array<i64: 3, 128>}]} {
    %c0_i32 = arith.constant 0 : i32
    %0 = arith.cmpi eq, %arg0, %c0_i32 : i32
    %1 = arith.extui %0 : i1 to i32
    %c0_i32_0 = arith.constant 0 : i32
    %2 = arith.cmpi ne, %1, %c0_i32_0 : i32
    scf.if %2 {
      %cst_9 = arith.constant 0.000000e+00 : f32
      %24 = vector.broadcast %cst_9 : f32 to vector<8x128xf32>
      %25 = arith.index_cast %arg1 : i32 to index
      %c0_10 = arith.constant 0 : index
      %c0_11 = arith.constant 0 : index
      %26 = vector.load %arg5[%25, %c0_10, %c0_11] : memref<3x8x128xf32, #tpu.memory_space<vmem>>, vector<1x8x128xf32>
      %27 = vector.shape_cast %26 : vector<1x8x128xf32> to vector<8x128xf32>
      %28 = vector.shape_cast %24 : vector<8x128xf32> to vector<1x8x128xf32>
      tpu.vector_store %arg5[%25, %c0_10, %c0_11], %28 {strides = array<i32>} : memref<3x8x128xf32, #tpu.memory_space<vmem>>, vector<1x8x128xf32>,
    } else {
    }
    %3 = arith.index_cast %arg1 : i32 to index
    %c0 = arith.constant 0 : index
    %c0_1 = arith.constant 0 : index
    %4 = vector.load %arg5[%3, %c0, %c0_1] : memref<3x8x128xf32, #tpu.memory_space<vmem>>, vector<1x8x128xf32>
    %5 = vector.shape_cast %4 : vector<1x8x128xf32> to vector<8x128xf32>
    %c0_i32_2 = arith.constant 0 : i32
    %6 = tpu.assume_multiple %c0_i32_2, 8 : i32
    %c0_3 = arith.constant 0 : index
    %7 = arith.index_cast %6 : i32 to index
    %c0_4 = arith.constant 0 : index
    %8 = vector.load %arg2[%c0_3, %7, %c0_4] : memref<1x8x128xf32, #tpu.memory_space<vmem>>, vector<1x8x128xf32>
    %9 = vector.shape_cast %8 : vector<1x8x128xf32> to vector<8x128xf32>
    %10 = arith.index_cast %6 : i32 to index
    %c0_5 = arith.constant 0 : index
    %11 = vector.load %arg3[%10, %c0_5] : memref<8x128xf32, #tpu.memory_space<vmem>>, vector<8x128xf32>
    %12 = arith.subf %9, %11 : vector<8x128xf32>
    %13 = arith.mulf %12, %12 : vector<8x128xf32>
    %14 = vector.shape_cast %13 : vector<8x128xf32> to vector<1x8x128xf32>
    %cst = arith.constant dense<0.000000e+00> : vector<8x128xf32>
    %15 = vector.multi_reduction <add>, %14, %cst [0] : vector<1x8x128xf32> to vector<8x128xf32>
    %16 = arith.addf %5, %15 : vector<8x128xf32>
    %17 = arith.index_cast %arg1 : i32 to index
    %c0_6 = arith.constant 0 : index
    %c0_7 = arith.constant 0 : index
    %18 = vector.load %arg5[%17, %c0_6, %c0_7] : memref<3x8x128xf32, #tpu.memory_space<vmem>>, vector<1x8x128xf32>
    %19 = vector.shape_cast %18 : vector<1x8x128xf32> to vector<8x128xf32>
    %20 = vector.shape_cast %16 : vector<8x128xf32> to vector<1x8x128xf32>
    tpu.vector_store %arg5[%17, %c0_6, %c0_7], %20 {strides = array<i32>} : memref<3x8x128xf32, #tpu.memory_space<vmem>>, vector<1x8x128xf32>,
    %c1_i32 = arith.constant 1 : i32
    %21 = arith.cmpi eq, %arg0, %c1_i32 : i32
    %22 = arith.extui %21 : i1 to i32
    %c0_i32_8 = arith.constant 0 : i32
    %23 = arith.cmpi ne, %22, %c0_i32_8 : i32
    scf.if %23 {
      %24 = arith.index_cast %arg1 : i32 to index
      %c0_9 = arith.constant 0 : index
      %c0_10 = arith.constant 0 : index
      %25 = vector.load %arg5[%24, %c0_9, %c0_10] : memref<3x8x128xf32, #tpu.memory_space<vmem>>, vector<1x8x128xf32>
      %26 = vector.shape_cast %25 : vector<1x8x128xf32> to vector<8x128xf32>
      %27 = vector.shape_cast %26 : vector<8x128xf32> to vector<1x8x128xf32>
      %cst_11 = arith.constant dense<0.000000e+00> : vector<1xf32>
      %28 = vector.multi_reduction <add>, %27, %cst_11 [1, 2] : vector<1x8x128xf32> to vector<1xf32>
      %29 = vector.shape_cast %28 : vector<1xf32> to vector<1x1x1xf32>
      %30 = vector.extract %29[0, 0, 0] : f32 from vector<1x1x1xf32>
      %cst_12 = arith.constant 4.8828125E-4 : f32
      %31 = arith.mulf %30, %cst_12 : f32
      %32 = vector.broadcast %31 : f32 to vector<1x128xf32>
      %33 = arith.index_cast %arg1 : i32 to index
      %c0_13 = arith.constant 0 : index
      %34 = vector.load %arg4[%33, %c0_13] : memref<3x128xf32, #tpu.memory_space<vmem>>, vector<1x128xf32>
      tpu.vector_store %arg4[%33, %c0_13], %32 {strides = array<i32>} : memref<3x128xf32, #tpu.memory_space<vmem>>, vector<1x128xf32>,
    } else {
    }
    return
  }
  func.func @transform_0(%arg0: i32, %arg1: i32) -> (i32, i32, i32) {
    %c0_i32 = arith.constant 0 : i32
    %c0_i32_0 = arith.constant 0 : i32
    return %arg1, %arg0, %c0_i32 : i32, i32, i32
  }
  func.func @transform_1(%arg0: i32, %arg1: i32) -> (i32, i32) {
    %c0_i32 = arith.constant 0 : i32
    %c0_i32_0 = arith.constant 0 : i32
    return %arg0, %c0_i32 : i32, i32
  }
  func.func @transform_2(%arg0: i32, %arg1: i32) -> (i32, i32) {
    %c0_i32 = arith.constant 0 : i32
    %c0_i32_0 = arith.constant 0 : i32
    %c0_i32_1 = arith.constant 0 : i32
    return %c0_i32, %c0_i32_0 : i32, i32
  }
}

</mosaic_0001>

<bundles_post_ra>
// kernel: tpu_custom_call.1
= control target key start
LH: loop header
LB: loop body
LE: loop exit
PB: predicated region body
PF: predicated region fallthrough
CT: control target
= control target key end

     0   :  { %7 = vsyncpa [#allocation4], 0  ;;  %s886_s0 = inlined_call_operand.hbm [shape: f32[3,16,128], index: 0, kind: input, shape index: {}]   ;;  %s887_s1 = inlined_call_operand.hbm [shape: f32[16,128], index: 1, kind: input, shape index: {}]   ;;  %s888_s2 = inlined_call_operand.hbm [shape: f32[3,128], index: 2, kind: output, shape index: {}]  }
   0x1   :  { %9 = vsyncpa [#allocation4 + $0x1], 0 }
   0x2   :  { %10 = vsyncpa [#allocation7], 0 }
   0x3   :  { %12 = vsyncpa [#allocation7 + $0x1], 0 }
   0x4   :  { %13 = vsyncpa [#allocation5], 0  ;;  %s662_s9 = smov 0   ;;  %s664_s10 = smov 0  }
   0x5   :  { %s666_s11 = smov 0   ;;  %s668_s12 = smov 0  }
   0x6   :  { %s670_s13 = smov 0   ;;  %s672_s14 = smov 0  }
   0x7   :  { %s674_s15 = smov 0   ;;  %s676_s16 = smov 0  }
   0x8   :  { %s678_s17 = smov 0   ;;  %s680_s18 = smov 0  }
   0x9   :  { %s682_s19 = smov 0  }
   0xa LB: > { %s889_s20 = sadd.s32 4294967295, %s641_s19   ;;  %s28_s21 = sadd.s32 1, %s633_s17  ;;  %s641_s19 = sphi %s682_s19, %s19_s19   ;;  %s637_s18 = sphi %s680_s18, %s918_s18   ;;  %s633_s17 = sphi %s678_s17, %s917_s17   ;;  %s629_s16 = sphi %s676_s16, %s916_s16   ;;  %s625_s15 = sphi %s674_s15, %s915_s15   ;;  %s621_s14 = sphi %s672_s14, %s914_s14   ;;  %s617_s13 = sphi %s670_s13, %s913_s13   ;;  %s613_s12 = sphi %s668_s12, %s912_s12   ;;  %s609_s11 = sphi %s666_s11, %s911_s11   ;;  %s605_s10 = sphi %s664_s10, %s910_s10   ;;  %s601_s9 = sphi %s662_s9, %s909_s9  }
   0xb   : > { %p29_p0 = scmp.ge.s32.totalorder %s28_s21, 3  ;;  %s31_s22 = sadd.s32 1, %s637_s18 }
   0xc   : > { %s40_s23 = sadd.s32 1, %s621_s14  ;;  %p47_p1 = scmp.ne.s32.totalorder %s621_s14, %s617_s13 }
   0xd   : > { %s920_s21 = smov (%p29_p0, %s28_s21), 0  ;;  %s922_s22 = smov (!%p29_p0, %s31_s22), %s637_s18 }
   0xe   : > { %894 = sst [smem:[#allocation12_spill]] %s920_s21  ;;  %s35_s24 = ssub.s32 %s633_s17, %s920_s21 }
   0xf   : > { %p892_p2 = scmp.eq.s32.totalorder %s641_s19, 0  ;;  %p33_p3 = scmp.ge.s32.totalorder %s922_s22, 2 }
  0x10   : > { %p53_p4 = scmp.ne.s32.totalorder %s617_s13, %s613_s12  ;;  %p736_p6 = scmp.eq.s32.totalorder %s889_s20, 0 }
  0x11   : > { %p730_p5 = por %p892_p2, %p47_p1  ;;  %s924_s22 = smov (%p33_p3, %s922_s22), 0 }
  0x12   : > { %897 = sst [smem:[#allocation13_spill]] %s924_s22  ;;  %p744_p7 = por %p736_p6, %p53_p4 }
  0x13   : > { %s750_s28 = ssub.s32 %s637_s18, %s924_s22  ;;  %p893_p8 = scmp.lt.s32.totalorder %s641_s19, 6 }
  0x14   : > { %s37_s29 = sor.u32 %s750_s28, %s35_s24  ;;  %p64_p9 = scmp.eq.s32.totalorder %s750_s28, 0 }
  0x15   : > { %p38_p10 = scmp.eq.s32.totalorder %s37_s29, 0  ;;  %s124_s30 = sand.u32 1, %s621_s14  }
  0x16   : > { %s337_s3 = sshll.u32 %s124_s30, 3  ;;  %s338_s5 = sshll.u32 %s633_s17, 1 }
  0x17   : > { %s757_s4 = scalar_select %p38_p10, %s621_s14, %s40_s23  }
  0x18   : > { %s133_s6 = sadd.s32 %s637_s18, %s338_s5  ;;  %s128_s7 = scalar_lea.vmem [#allocation3], %s337_s3 }
  0x19   : > { %s137_s8 = sshll.u32 %s128_s7, 4  ;;  %s339_s12 = sshll.u32 %s133_s6, 7  ;;  %s138_s8 = int_to_ptr.vmem [resolvable:$true] %s137_s8 }
  0x1a   : > { %s135_s21 = scalar_lea.hbm %s886_s0, %s339_s12  ;;  %p768_p11 = pnand %p893_p8, %p730_p5 }
  0x1b   : > { %p342_p12 = scmp.ge.s32.totalorder %s641_s19, 1  ;;  %p160_p13 = scmp.lt.s32.totalorder %s641_s19, 7 }
  0x1c   : > { %s125_s23 = scalar_lea.sflag [#allocation4], %s124_s30  ;;  %p465_p0 = pneg %p768_p11 }
  0x1d   : > { %s476_s29 = scalar_lea.vmem %s138_s8, 128  ;;  %s643_s3 = smov [#allocation3]  }
  0x1e   : > { %p477_p1 = scmp.ne.s32.totalorder %s138_s8, %s476_s29  ;;  %s481_s5 = sshll.u32 %s643_s3, 4  ;;  %s482_s5 = int_to_ptr.vmem [resolvable:$false] %s481_s5 }
  0x1f   : > { %s483_s20 = scalar_lea.vmem %s482_s5, 256  ;;  %p484_p10 = scmp.lt.s32.totalorder %s138_s8, %s482_s5 }
  0x20   : > { %p479_p3 = pnand %p477_p1, %p465_p0  ;;  %p485_p2 = scmp.lt.s32.totalorder %s483_s20, %s476_s29 }
  0x22   : > { %p480_p4 = pneg %p479_p3  ;;  %p486_p5 = por %p485_p2, %p484_p10 }
  0x24   : > { %p487_p8 = pnand %p486_p5, %p480_p4 }
  0x26   : > { %490 = shalt.err (!%p487_p8)
}
  0x27   : > { %366 = dma.hbm_to_vmem [thread:$0]  (!%p768_p11), %s135_s21, 128, %s138_s8, %s125_s23  }
  0x28   : > { %p782_p2 = pnand %p342_p12, %p160_p13  ;;  %s66_s25 = sadd.s32 1, %s609_s11 }
  0x29   : > { %p73_p8 = scmp.ne.s32.totalorder %s609_s11, %s605_s10  ;;  %p901_p0 = scmp.eq.s32.totalorder %s641_s19, 0 }
  0x2a   : > { %s792_s30 = scalar_select %p64_p9, %s609_s11, %s66_s25  }
  0x2b   : > { %p75_p1 = por %p73_p8, %p901_p0  ;;  %p79_p3 = scmp.ne.s32.totalorder %s605_s10, %s601_s9 }
  0x2c   : > { %s144_s6 = sand.u32 1, %s609_s11   ;;  %s341_s7 = sshll.u32 %s637_s18, 7 }
  0x2d   : > { %p802_p4 = por %p79_p3, %p736_p6  ;;  %s340_s21 = sshll.u32 %s144_s6, 3 }
  0x2e   : > { %s153_s23 = scalar_lea.hbm %s887_s1, %s341_s7  ;;  %p903_p11 = scmp.lt.s32.totalorder %s641_s19, 6 }
  0x2f   : > { %s148_s29 = scalar_lea.vmem [#allocation6], %s340_s21  ;;  %s145_s3 = scalar_lea.sflag [#allocation7], %s144_s6 }
  0x30   : > { %p811_p12 = pnand %p903_p11, %p75_p1  ;;  %s155_s9 = sshll.u32 %s148_s29, 4  ;;  %s156_s9 = int_to_ptr.vmem [resolvable:$true] %s155_s9 }
  0x31   : > { %s504_s26 = scalar_lea.vmem %s156_s9, 128  ;;  %s644_s5 = smov [#allocation6]  }
  0x32   : > { %p493_p6 = pneg %p811_p12  ;;  %p505_p9 = scmp.ne.s32.totalorder %s156_s9, %s504_s26 }
  0x33   : > { %s509_s20 = sshll.u32 %s644_s5, 4  ;;  %s510_s20 = int_to_ptr.vmem [resolvable:$false] %s509_s20 }
  0x34   : > { %p507_p13 = pnand %p505_p9, %p493_p6  ;;  %s511_s25 = scalar_lea.vmem %s510_s20, 256 }
  0x35   : > { %p512_p5 = scmp.lt.s32.totalorder %s156_s9, %s510_s20  ;;  %p513_p8 = scmp.lt.s32.totalorder %s511_s25, %s504_s26 }
  0x36   : > { %p508_p10 = pneg %p507_p13 }
  0x37   : > { %p514_p0 = por %p513_p8, %p512_p5 }
  0x39   : > { %p515_p1 = pnand %p514_p0, %p508_p10 }
  0x3b   : > { %518 = shalt.err (!%p515_p1)
}
  0x3c   : > { %369 = dma.hbm_to_vmem [thread:$0]  (!%p811_p12), %s153_s23, 128, %s156_s9, %s145_s3  }
  0x3d   : > { %164 = sbr.rel (%p782_p2) target bundleno = 316 (0x13c), region = 28  ;;  %s166_s6 = sand.u32 (!%p782_p2), 1, %s617_s13  }
  0x3e   : > { %s343_s7 = sshll.u32 (!%p782_p2), %s166_s6, 3  ;;  %s167_s21 = scalar_lea.sflag (!%p782_p2), [#allocation4], %s166_s6 }
  0x3f   : > { %s170_s8 = scalar_lea.vmem (!%p782_p2), [#allocation3], %s343_s7 }
  0x42   : > { %588 = dma.done.wait (%p744_p7), %s167_s21, 128  }
  0x43   : > { %590 = vsyncadd (%p744_p7), %s167_s21, 4294967168  ;;  %s175_s24 = sand.u32 1, %s605_s10  }
  0x44   : > { %s344_s29 = sshll.u32 %s175_s24, 3  ;;  %s176_s28 = scalar_lea.sflag [#allocation7], %s175_s24 }
  0x45   : > { %s179_s23 = scalar_lea.vmem [#allocation6], %s344_s29 }
  0x46   : > { %592 = dma.done.wait (%p802_p4), %s176_s28, 128  }
  0x47   : > { %594 = vsyncadd (%p802_p4), %s176_s28, 4294967168  ;;  %p345_p2 = scmp.ne.s32.totalorder %s629_s16, 0 }
  0x48   : > { %s346_s22 = sshll.u32 (!%p345_p2), %s625_s15, 3 }
  0x49   : > { %203 = sbr.rel (%p345_p2) target bundleno = 80 (0x50), region = 40  ;;  %s205_s9 = scalar_lea.vmem (!%p345_p2), [#allocation2], %s346_s22 }
  0x4e   : > { %v645_v0 = vmov 0.0  }
  0x4f   : > { %206 = vst [vmem:[%s205_s9] sm:$0xff] %v645_v0 }
  0x50 PF: > { %s347_s27 = sshll.u32 %s625_s15, 3  ;;  %v210_v1 = vld [vmem:[%s170_s8] sm:$0xff]  ;;  %v211_v2 = vld [vmem:[%s179_s23] sm:$0xff]  ;;  %p348_p7 = scmp.ne.s32.totalorder %s629_s16, 1 }
  0x51   : > { %v212_v3 = vsub.f32 %v210_v1, %v211_v2  ;;  %s208_s3 = scalar_lea.vmem [#allocation2], %s347_s27  ;;  %s233_s5 = scalar_lea.vmem (!%p348_p7), [#allocation8], %s625_s15 }
  0x53   : > { %v213_v5 = vmul.f32 %v212_v3, %v212_v3 }
  0x55   : > { %220 = sbr.rel (%p348_p7) target bundleno = 301 (0x12d), region = 44 }
  0x56   : > { %v209_v4 = vld [vmem:[%s208_s3] sm:$0xff] }
  0x57   : > { %v215_v6 = vadd.f32 %v213_v5, %v209_v4 }
  0x59   : > { %216 = vst [vmem:[%s208_s3] sm:$0xff] %v215_v6 }
  0x60   : > { %v221_v7 = vld [vmem:[%s208_s3] sm:$0xff] }
  0x61   : > { %222 = vadd.xlane.f32.xlu0 %v221_v7 }
  0xea   : > { %v223_v8 = vpop.xlane.xlu0 %222 }
  0xeb   : > { %v224_v9 = vrot.slane %v223_v8, 4 }
  0xed   : > { %v225_v10 = vadd.f32 %v224_v9, %v223_v8 }
  0xef   : > { %v226_v11 = vrot.slane %v225_v10, 2 }
  0xf1   : > { %v227_v12 = vadd.f32 %v226_v11, %v225_v10 }
  0xf3   : > { %v228_v13 = vrot.slane %v227_v12, 1 }
  0xf5   : > { %v229_v14 = vadd.f32 %v228_v13, %v227_v12 }
  0xf7   : > { %353 = vpush %v229_v14 }
 0x128   : > { %s354_s12 = spop %353 }
 0x129   : > { %s231_s26 = smul.f32 0.00048828125, %s354_s12 }
 0x12b   : > { %v232_v15 = vstv %s231_s26 }
 0x12c   : > { %234 = vst [vmem:[%s233_s5] sm:$0x1] %v232_v15 }
 0x12d PF: > { %s905_s16 = sadd.s32 4294967295, %s641_s19   ;;  %s646_s25 = smov [#allocation8]  }
 0x12e   : > { %p838_p3 = scmp.eq.s32.totalorder %s905_s16, 5  ;;  %s242_s6 = sshll.u32 %s646_s25, 4  ;;  %s243_s6 = int_to_ptr.vmem [resolvable:$true] %s242_s6 }
 0x12f   : > { %s519_s7 = scalar_lea.vmem %s243_s6, 64  ;;  %p526_p6 = scmp.lt.s32.totalorder %s243_s6, %s243_s6 }
 0x130   : > { %p520_p4 = scmp.ne.s32.totalorder %s243_s6, %s519_s7  ;;  %p527_p9 = scmp.lt.s32.totalorder %s519_s7, %s519_s7 }
 0x132   : > { %p521_p11 = pnand %p520_p4, %p838_p3  ;;  %p528_p13 = por %p527_p9, %p526_p6 }
 0x134   : > { %p522_p12 = pneg %p521_p11 }
 0x136   : > { %p529_p10 = pnand %p528_p13, %p522_p12 }
 0x138   : > { %532 = shalt.err (!%p529_p10)
}
 0x139   : > { %360 = dma.vmem_to_hbm [thread:$0]  (%p838_p3), %s243_s6, 64, %s888_s2, [#allocation5]  }
 0x13a   : > { %596 = dma.done.wait (%p838_p3), [#allocation5], 64  }
 0x13b   : > { %598 = vsyncadd (%p838_p3), [#allocation5], 4294967232 }
 0x13c PF: > { %s19_s19 = sadd.s32 1, %s641_s19   ;;  %s907_s8 = sld [smem:[#allocation12_spill]] }
 0x13d   : > { %p16_p5 = scmp.ge.s32.totalorder %s19_s19, 8   ;;  %s908_s24 = sld [smem:[#allocation13_spill]] }
 0x13e   : > { %s909_s9 = smov %s605_s10  ;;  %s910_s10 = smov %s609_s11 }
 0x13f   : > { %s911_s11 = smov %s792_s30  ;;  %s912_s12 = smov %s617_s13 }
 0x140   : > { %s913_s13 = smov %s621_s14  ;;  %s914_s14 = smov %s757_s4 }
 0x141   : > { %s915_s15 = smov %s633_s17  ;;  %s916_s16 = smov %s637_s18 }
 0x142   : > { %s917_s17 = smov %s907_s8  ;;  %18 = sbr.rel (!%p16_p5) target bundleno = 10 (0xa), region = 89 }
 0x143   : > { %s918_s18 = smov %s908_s24 }
 0x147   :  { %255 = vsyncpa [#allocation4], 1 }
 0x148   :  { %257 = vsyncpa [#allocation4 + $0x1], 1 }
 0x149   :  { %258 = vsyncpa [#allocation7], 1 }
 0x14a   :  { %260 = vsyncpa [#allocation7 + $0x1], 1 }
 0x14b   :  { %261 = vsyncpa [#allocation5], 1 }
 0x14c   :  { %263 = vsyncpa [#allocation5 + $0x1], 1 }

</bundles_post_ra>
